<compile_context>
chip_gen: v5e
topology: v5e:2x2
jax: 0.10.0
libtpu: 0.0.40
codegen_flags: <defaults>
</compile_context>

<pallas_src>
import functools

import jax
import jax.numpy as jnp
from jax.experimental import pallas as pl
from jax.experimental.pallas import tpu as pltpu


def _round_up(x, m):
    return ((x + m - 1) // m) * m


def actor_forward_kernel(x_ref, w1_ref, b1_ref, w2_ref, b2_ref,
                         w3_ref, b3_ref, out_ref):
    """Fused MLP (Linear-ReLU-Linear-ReLU-Linear) + softmax over actions.

    Operates on one (TB, input_dims) row tile; weights (bf16) and biases
    (f32) are the full, VMEM-resident parameter tensors. Matmuls take bf16
    operands and accumulate in f32 on the MXU; bias/ReLU/softmax are f32.
    """
    x = x_ref[...].astype(jnp.bfloat16)

    # fc1 + ReLU
    h1 = jnp.dot(x, w1_ref[...], preferred_element_type=jnp.float32) + b1_ref[...]
    h1 = jnp.maximum(h1, 0.0).astype(jnp.bfloat16)

    # fc2 + ReLU
    h2 = jnp.dot(h1, w2_ref[...], preferred_element_type=jnp.float32) + b2_ref[...]
    h2 = jnp.maximum(h2, 0.0).astype(jnp.bfloat16)

    # fc3 (logits, padded to a lane-dense action dim; padded lanes hold ~-1e30)
    logits = jnp.dot(h2, w3_ref[...], preferred_element_type=jnp.float32) + b3_ref[...]

    # Numerically-stable softmax along the action axis (dim=-1).
    # EUP approx reciprocal + one Newton refinement -> ~f32-exact 1/sum while
    # staying off the VALU divide path. Padded lanes give exp(-1e30 - m) == 0.
    m = jnp.max(logits, axis=-1, keepdims=True)
    e = jnp.exp(logits - m)
    s = jnp.sum(e, axis=-1, keepdims=True)
    inv = pl.reciprocal(s, approx=True)
    inv = inv * (2.0 - s * inv)          # Newton step: error ~ (1e-4)^2
    out_ref[...] = (e * inv).astype(out_ref.dtype)


def _vmem_bytes_estimate(tb, input_dims, fc1, fc2, n_pad):
    """Rough VMEM footprint: double-buffered row tiles, double-buffered
    (pinned) bf16 weights + f32 biases, and live f32 activations."""
    f32, bf16 = 4, 2
    x_tiles = 2 * tb * input_dims * f32
    out_tiles = 2 * tb * n_pad * f32
    # Pinned-index inputs are still double-buffered by the default pipeline.
    params = 2 * ((input_dims * fc1 + fc1 * fc2 + fc2 * n_pad) * bf16
                  + (fc1 + fc2 + n_pad) * f32)
    acts = tb * (fc1 + fc2 + 2 * n_pad) * f32
    return x_tiles + out_tiles + params + acts


@functools.partial(jax.jit, static_argnames=("block_batch", "trim_output"))
def actor_forward(state, params, *, block_batch=512, trim_output=True):
    """Row-tiled, parameter-resident forward pass.

    Returns softmax action probabilities.
      trim_output=True  -> (batch, n_actions)  (PyTorch-module contract)
      trim_output=False -> (padded_batch, n_pad) with padded action lanes
                           exactly 0; avoids an extra HBM round trip. The
                           consumer must restrict to [:batch, :n_actions].
    """
    w1, b1, w2, b2, w3, b3 = params
    batch, input_dims = state.shape
    fc1 = w1.shape[1]
    fc2 = w2.shape[1]
    n_actions = w3.shape[1]

    # ---- batch tiling (multiple of 8 sublanes; pad ragged batch with zeros).
    rows = _round_up(batch, 8)
    tb = min(block_batch, rows)
    # Keep >= 2 grid steps whenever there is enough work, so v7x's two
    # TensorCores both get a share under dimension_semantics=("parallel",).
    if rows > 8 and rows // tb < 2:
        tb = _round_up(-(-rows // 2), 8)          # ceil(rows/2), multiple of 8
    padded_batch = _round_up(batch, tb)
    if padded_batch != batch:
        state = jnp.pad(state, ((0, padded_batch - batch), (0, 0)))
    num_tiles = padded_batch // tb

    # ---- lane-dense action dim: pad fc3 to a multiple of 128 lanes.
    # Zero weight columns + very negative bias => padded logits ~ -1e30,
    # exp underflows to exactly 0, so softmax over real actions is unchanged.
    n_pad = _round_up(n_actions, 128)
    if n_pad != n_actions:
        w3 = jnp.pad(w3, ((0, 0), (0, n_pad - n_actions)))
        b3 = jnp.pad(b3, ((0, 0), (0, n_pad - n_actions)), constant_values=-1e30)

    # ---- bf16 weights for the MXU (biases stay f32 for the VPU adds).
    w1 = w1.astype(jnp.bfloat16)
    w2 = w2.astype(jnp.bfloat16)
    w3 = w3.astype(jnp.bfloat16)

    # ---- specs: x/out tiled over rows; params pinned at block (0, 0) so
    # they are fetched once and stay VMEM-resident across all grid steps.
    x_spec = pl.BlockSpec((tb, input_dims), lambda i: (i, 0))
    param_specs = [
        pl.BlockSpec((input_dims, fc1), lambda i: (0, 0)),
        pl.BlockSpec((1, fc1), lambda i: (0, 0)),
        pl.BlockSpec((fc1, fc2), lambda i: (0, 0)),
        pl.BlockSpec((1, fc2), lambda i: (0, 0)),
        pl.BlockSpec((fc2, n_pad), lambda i: (0, 0)),
        pl.BlockSpec((1, n_pad), lambda i: (0, 0)),
    ]
    out_spec = pl.BlockSpec((tb, n_pad), lambda i: (i, 0))

    # ---- VMEM budgeting: only raise the scoped limit if the default would
    # be tight, and cap it from the actual hardware capacity (v7x: 64 MiB).
    est = _vmem_bytes_estimate(tb, input_dims, fc1, fc2, n_pad)
    compiler_kwargs = {"dimension_semantics": ("parallel",)}
    default_scoped = 32 * 1024 * 1024
    if est > default_scoped:
        try:
            capacity = pltpu.get_tpu_info().vmem_capacity_bytes
        except Exception:
            capacity = 64 * 1024 * 1024           # conservative (v7x) fallback
        cap = max(default_scoped, capacity - 16 * 1024 * 1024)
        compiler_kwargs["vmem_limit_bytes"] = min(est, cap)

    probs_padded = pl.pallas_call(
        actor_forward_kernel,
        out_shape=jax.ShapeDtypeStruct((padded_batch, n_pad), jnp.float32),
        grid=(num_tiles,),
        in_specs=[x_spec] + param_specs,
        out_specs=out_spec,
        compiler_params=pltpu.CompilerParams(**compiler_kwargs),
    )(state, w1, b1, w2, b2, w3, b3)

    if trim_output:
        # Strip batch padding and padded action lanes (extra HBM round trip;
        # use trim_output=False when the consumer can handle padded lanes).
        return probs_padded[:batch, :n_actions]
    return probs_padded


def init_params(key, input_dims, fc1_dims, fc2_dims, n_actions):
    """Deterministic init mimicking PyTorch nn.Linear default
    (uniform(-1/sqrt(fan_in), 1/sqrt(fan_in))). Weights stored as
    (in_features, out_features) f32 (cast to bf16 inside actor_forward);
    biases as (1, out_features) f32 for TPU-friendly 2D broadcasting."""
    ks = jax.random.split(key, 6)

    def lin(kw, kb, fan_in, fan_out):
        bound = 1.0 / jnp.sqrt(jnp.float32(fan_in))
        w = jax.random.uniform(kw, (fan_in, fan_out), jnp.float32, -bound, bound)
        b = jax.random.uniform(kb, (1, fan_out), jnp.float32, -bound, bound)
        return w, b

    w1, b1 = lin(ks[0], ks[1], input_dims, fc1_dims)
    w2, b2 = lin(ks[2], ks[3], fc1_dims, fc2_dims)
    w3, b3 = lin(ks[4], ks[5], fc2_dims, n_actions)
    return (w1, b1, w2, b2, w3, b3)


def _reference_forward(state, params):
    """Pure-JAX reference with the same bf16-operand / f32-accumulate scheme."""
    w1, b1, w2, b2, w3, b3 = params
    xb = state.astype(jnp.bfloat16)
    h1 = jnp.maximum(
        jnp.dot(xb, w1.astype(jnp.bfloat16),
                preferred_element_type=jnp.float32) + b1, 0.0)
    h2 = jnp.maximum(
        jnp.dot(h1.astype(jnp.bfloat16), w2.astype(jnp.bfloat16),
                preferred_element_type=jnp.float32) + b2, 0.0)
    logits = jnp.dot(h2.astype(jnp.bfloat16), w3.astype(jnp.bfloat16),
                     preferred_element_type=jnp.float32) + b3
    return jax.nn.softmax(logits, axis=-1)


if __name__ == "__main__":
    # Module-default hidden sizes (fc1=fc2=256); small env-like input/action
    # dims; batch chosen to exercise the >=2-grid-step split and ragged-batch
    # padding.
    batch, input_dims, fc1_dims, fc2_dims, n_actions = 200, 8, 256, 256, 4

    key = jax.random.PRNGKey(0)
    k_state, k_params = jax.random.split(key)

    state = jax.random.normal(k_state, (batch, input_dims), jnp.float32)
    params = init_params(k_params, input_dims, fc1_dims, fc2_dims, n_actions)

    # Padded-output contract (no post-kernel slice / HBM round trip).
    probs_pad = actor_forward(state, params, trim_output=False)
    probs_pad = jax.block_until_ready(probs_pad)
    assert probs_pad.shape[1] % 128 == 0
    # Padded action lanes must behave as hard zeros for any consumer.
    assert float(jnp.max(probs_pad[:batch, n_actions:])) < 1e-30

    probs = probs_pad[:batch, :n_actions]

    # PyTorch-module-shaped contract.
    probs_trim = jax.block_until_ready(actor_forward(state, params))
    assert probs_trim.shape == (batch, n_actions)

    # Sanity checks against a pure-JAX reference of the same math.
    ref = _reference_forward(state, params)
    assert jnp.allclose(probs, ref, atol=1e-4, rtol=1e-4)
    assert jnp.allclose(probs_trim, ref, atol=1e-4, rtol=1e-4)
    assert jnp.allclose(jnp.sum(probs, axis=-1), 1.0, atol=1e-4)

    # TODO(synk): Categorical distribution object (sampling/log_prob/entropy)
    # has no Pallas equivalent; the kernel returns the probability tensor it wraps.
    print("KERNEL_OK")
</pallas_src>

<mosaic_0001>
module attributes {stable_mosaic.version = 11 : i64} {
  func.func @actor_forward_kernel(%arg0: i32, %arg1: memref<104x8xf32, #tpu.memory_space<vmem>>, %arg2: memref<8x256xbf16, #tpu.memory_space<vmem>>, %arg3: memref<1x256xf32, #tpu.memory_space<vmem>>, %arg4: memref<256x256xbf16, #tpu.memory_space<vmem>>, %arg5: memref<1x256xf32, #tpu.memory_space<vmem>>, %arg6: memref<256x128xbf16, #tpu.memory_space<vmem>>, %arg7: memref<1x128xf32, #tpu.memory_space<vmem>>, %arg8: memref<104x128xf32, #tpu.memory_space<vmem>>) attributes {dimension_semantics = [#tpu.dimension_semantics<parallel>], iteration_bounds = array<i64: 2>, scalar_prefetch = 0 : i64, scratch_operands = 0 : i64, tpu.core_type = #tpu.core_type<tc>, window_params = [{transform_indices = @transform_0, window_bounds = array<i64: 104, 8>}, {pipeline_mode = #tpu.pipeline_mode<synchronous>, transform_indices = @transform_1, window_bounds = array<i64: 8, 256>}, {pipeline_mode = #tpu.pipeline_mode<synchronous>, transform_indices = @transform_2, window_bounds = array<i64: 1, 256>}, {pipeline_mode = #tpu.pipeline_mode<synchronous>, transform_indices = @transform_3, window_bounds = array<i64: 256, 256>}, {pipeline_mode = #tpu.pipeline_mode<synchronous>, transform_indices = @transform_4, window_bounds = array<i64: 1, 256>}, {pipeline_mode = #tpu.pipeline_mode<synchronous>, transform_indices = @transform_5, window_bounds = array<i64: 256, 128>}, {pipeline_mode = #tpu.pipeline_mode<synchronous>, transform_indices = @transform_6, window_bounds = array<i64: 1, 128>}, {transform_indices = @transform_7, window_bounds = array<i64: 104, 128>}]} {
    %c0 = arith.constant 0 : index
    %c0_0 = arith.constant 0 : index
    %0 = vector.load %arg1[%c0, %c0_0] : memref<104x8xf32, #tpu.memory_space<vmem>>, vector<104x8xf32>
    %1 = arith.truncf %0 : vector<104x8xf32> to vector<104x8xbf16>
    %c0_1 = arith.constant 0 : index
    %c0_2 = arith.constant 0 : index
    %2 = vector.load %arg2[%c0_1, %c0_2] : memref<8x256xbf16, #tpu.memory_space<vmem>>, vector<8x256xbf16>
    %cst = arith.constant dense<0.000000e+00> : vector<104x256xf32>
    %3 = tpu.matmul %1, %2, %cst {dimension_numbers = #tpu.dot_dimension_numbers<[1], [0], [0], [1], [0, 0, 1, 1], [], []>} : vector<104x8xbf16>, vector<8x256xbf16>, vector<104x256xf32> -> vector<104x256xf32>
    %c0_3 = arith.constant 0 : index
    %c0_4 = arith.constant 0 : index
    %4 = vector.load %arg3[%c0_3, %c0_4] : memref<1x256xf32, #tpu.memory_space<vmem>>, vector<1x256xf32>
    %5 = vector.broadcast %4 : vector<1x256xf32> to vector<104x256xf32>
    %6 = arith.addf %3, %5 : vector<104x256xf32>
    %cst_5 = arith.constant 0.000000e+00 : f32
    %7 = vector.broadcast %cst_5 : f32 to vector<104x256xf32>
    %8 = arith.maximumf %6, %7 : vector<104x256xf32>
    %9 = arith.truncf %8 : vector<104x256xf32> to vector<104x256xbf16>
    %c0_6 = arith.constant 0 : index
    %c0_7 = arith.constant 0 : index
    %10 = vector.load %arg4[%c0_6, %c0_7] : memref<256x256xbf16, #tpu.memory_space<vmem>>, vector<256x256xbf16>
    %cst_8 = arith.constant dense<0.000000e+00> : vector<104x256xf32>
    %11 = tpu.matmul %9, %10, %cst_8 {dimension_numbers = #tpu.dot_dimension_numbers<[1], [0], [0], [1], [0, 0, 1, 1], [], []>} : vector<104x256xbf16>, vector<256x256xbf16>, vector<104x256xf32> -> vector<104x256xf32>
    %c0_9 = arith.constant 0 : index
    %c0_10 = arith.constant 0 : index
    %12 = vector.load %arg5[%c0_9, %c0_10] : memref<1x256xf32, #tpu.memory_space<vmem>>, vector<1x256xf32>
    %13 = vector.broadcast %12 : vector<1x256xf32> to vector<104x256xf32>
    %14 = arith.addf %11, %13 : vector<104x256xf32>
    %cst_11 = arith.constant 0.000000e+00 : f32
    %15 = vector.broadcast %cst_11 : f32 to vector<104x256xf32>
    %16 = arith.maximumf %14, %15 : vector<104x256xf32>
    %17 = arith.truncf %16 : vector<104x256xf32> to vector<104x256xbf16>
    %c0_12 = arith.constant 0 : index
    %c0_13 = arith.constant 0 : index
    %18 = vector.load %arg6[%c0_12, %c0_13] : memref<256x128xbf16, #tpu.memory_space<vmem>>, vector<256x128xbf16>
    %cst_14 = arith.constant dense<0.000000e+00> : vector<104x128xf32>
    %19 = tpu.matmul %17, %18, %cst_14 {dimension_numbers = #tpu.dot_dimension_numbers<[1], [0], [0], [1], [0, 0, 1, 1], [], []>} : vector<104x256xbf16>, vector<256x128xbf16>, vector<104x128xf32> -> vector<104x128xf32>
    %c0_15 = arith.constant 0 : index
    %c0_16 = arith.constant 0 : index
    %20 = vector.load %arg7[%c0_15, %c0_16] : memref<1x128xf32, #tpu.memory_space<vmem>>, vector<1x128xf32>
    %21 = vector.broadcast %20 : vector<1x128xf32> to vector<104x128xf32>
    %22 = arith.addf %19, %21 : vector<104x128xf32>
    %cst_17 = arith.constant dense<0xFF800000> : vector<104xf32>
    %23 = vector.multi_reduction <maximumf>, %22, %cst_17 [1] : vector<104x128xf32> to vector<104xf32>
    %24 = vector.shape_cast %23 : vector<104xf32> to vector<104x1xf32>
    %25 = vector.broadcast %24 : vector<104x1xf32> to vector<104x128xf32>
    %26 = arith.subf %22, %25 : vector<104x128xf32>
    %27 = math.exp %26 : vector<104x128xf32>
    %cst_18 = arith.constant dense<0.000000e+00> : vector<104xf32>
    %28 = vector.multi_reduction <add>, %27, %cst_18 [1] : vector<104x128xf32> to vector<104xf32>
    %29 = vector.shape_cast %28 : vector<104xf32> to vector<104x1xf32>
    %30 = tpu.reciprocal %29 {approx = true} : vector<104x1xf32> -> vector<104x1xf32>
    %31 = arith.mulf %29, %30 : vector<104x1xf32>
    %cst_19 = arith.constant 2.000000e+00 : f32
    %32 = vector.broadcast %cst_19 : f32 to vector<104x1xf32>
    %33 = arith.subf %32, %31 : vector<104x1xf32>
    %34 = arith.mulf %30, %33 : vector<104x1xf32>
    %35 = vector.broadcast %34 : vector<104x1xf32> to vector<104x128xf32>
    %36 = arith.mulf %27, %35 : vector<104x128xf32>
    %c0_20 = arith.constant 0 : index
    %c0_21 = arith.constant 0 : index
    %37 = vector.load %arg8[%c0_20, %c0_21] : memref<104x128xf32, #tpu.memory_space<vmem>>, vector<104x128xf32>
    tpu.vector_store %arg8[%c0_20, %c0_21], %36 {strides = array<i32>} : memref<104x128xf32, #tpu.memory_space<vmem>>, vector<104x128xf32>,
    return
  }
  func.func @transform_0(%arg0: i32) -> (i32, i32) {
    %c0_i32 = arith.constant 0 : i32
    %c0_i32_0 = arith.constant 0 : i32
    return %arg0, %c0_i32 : i32, i32
  }
  func.func @transform_1(%arg0: i32) -> (i32, i32) {
    %c0_i32 = arith.constant 0 : i32
    %c0_i32_0 = arith.constant 0 : i32
    %c0_i32_1 = arith.constant 0 : i32
    return %c0_i32, %c0_i32_0 : i32, i32
  }
  func.func @transform_2(%arg0: i32) -> (i32, i32) {
    %c0_i32 = arith.constant 0 : i32
    %c0_i32_0 = arith.constant 0 : i32
    %c0_i32_1 = arith.constant 0 : i32
    return %c0_i32, %c0_i32_0 : i32, i32
  }
  func.func @transform_3(%arg0: i32) -> (i32, i32) {
    %c0_i32 = arith.constant 0 : i32
    %c0_i32_0 = arith.constant 0 : i32
    %c0_i32_1 = arith.constant 0 : i32
    return %c0_i32, %c0_i32_0 : i32, i32
  }
  func.func @transform_4(%arg0: i32) -> (i32, i32) {
    %c0_i32 = arith.constant 0 : i32
    %c0_i32_0 = arith.constant 0 : i32
    %c0_i32_1 = arith.constant 0 : i32
    return %c0_i32, %c0_i32_0 : i32, i32
  }
  func.func @transform_5(%arg0: i32) -> (i32, i32) {
    %c0_i32 = arith.constant 0 : i32
    %c0_i32_0 = arith.constant 0 : i32
    %c0_i32_1 = arith.constant 0 : i32
    return %c0_i32, %c0_i32_0 : i32, i32
  }
  func.func @transform_6(%arg0: i32) -> (i32, i32) {
    %c0_i32 = arith.constant 0 : i32
    %c0_i32_0 = arith.constant 0 : i32
    %c0_i32_1 = arith.constant 0 : i32
    return %c0_i32, %c0_i32_0 : i32, i32
  }
  func.func @transform_7(%arg0: i32) -> (i32, i32) {
    %c0_i32 = arith.constant 0 : i32
    %c0_i32_0 = arith.constant 0 : i32
    return %arg0, %c0_i32 : i32, i32
  }
}

</mosaic_0001>

<bundles_post_ra>
// kernel: actor_forward.1
= control target key start
LH: loop header
LB: loop body
LE: loop exit
PB: predicated region body
PF: predicated region fallthrough
CT: control target
= control target key end

     0   :  { %12 = vsyncpa [#allocation3], 0  ;;  %s2356_s0 = inlined_call_operand.vmem [shape: f32[208,8], index: 0, kind: input, shape index: {}]   ;;  %s2357_s1 = inlined_call_operand.vmem [shape: bf16[8,256], index: 1, kind: input, shape index: {}]   ;;  %s2358_s2 = inlined_call_operand.vmem [shape: f32[1,256], index: 2, kind: input, shape index: {}]   ;;  %s2359_s3 = inlined_call_operand.vmem [shape: bf16[256,256], index: 3, kind: input, shape index: {}]   ;;  %s2360_s4 = inlined_call_operand.vmem [shape: f32[1,256], index: 4, kind: input, shape index: {}]   ;;  %s2361_s5 = inlined_call_operand.vmem [shape: bf16[256,128], index: 5, kind: input, shape index: {}]   ;;  %s2362_s6 = inlined_call_operand.vmem [shape: f32[1,128], index: 6, kind: input, shape index: {}]   ;;  %s2363_s7 = inlined_call_operand.hbm [shape: f32[208,128], index: 7, kind: output, shape index: {}]  }
   0x1   :  { %14 = vsyncpa [#allocation3 + $0x1], 0  ;;  %s1807_s24 = smov 0   ;;  %s1809_s25 = smov 0  }
   0x2   :  { %s1811_s26 = smov 0   ;;  %s1813_s27 = smov 0  }
   0x3 LB: > { %s1828_s28 = sadd.s32 4294967295, %s1763_s27   ;;  %s1343_s29 = sadd.s32 4294967294, %s1763_s27   ;;  %s1763_s27 = sphi %s1813_s27, %s2369_s27   ;;  %s1759_s26 = sphi %s1811_s26, %s2368_s26   ;;  %s1755_s25 = sphi %s1809_s25, %s2367_s25   ;;  %s1751_s24 = sphi %s1807_s24, %s2366_s24  }
   0x4   : > { %s1832_s30 = sadd.s32 1, %s1763_s27   ;;  %s179_s8 = sadd.s32 1, %s1759_s26 }
   0x5   : > { %s176_s9 = ssub.s32 %s1763_s27, %s1832_s30  ;;  %p189_p0 = scmp.ne.s32.totalorder %s1759_s26, %s1755_s25 }
   0x6   : > { %p177_p1 = scmp.eq.s32.totalorder %s176_s9, 0  ;;  %p190_p2 = scmp.eq.s32.totalorder %s1828_s28, 1 }
   0x7   : > { %p195_p3 = scmp.ne.s32.totalorder %s1755_s25, %s1751_s24  ;;  %p196_p4 = scmp.eq.s32.totalorder %s1343_s29, 1 }
   0x8   : > { %s1843_s10 = scalar_select %p177_p1, %s1759_s26, %s179_s8  }
   0x9   : > { %p1845_p5 = por %p190_p2, %p189_p0  ;;  %p1849_p6 = por %p196_p4, %p195_p3 }
   0xa   : > { %p1346_p7 = scmp.ge.s32.totalorder %s1763_s27, 1  ;;  %p241_p8 = scmp.lt.s32.totalorder %s1763_s27, 3 }
   0xc   : > { %p242_p9 = pnand %p1346_p7, %p241_p8 }
   0xd   : > { %s273_s15 = smul.u32 (!%p242_p9), 13, %s1828_s28  ;;  %s1721_s29 = scalar_lea.hbm (!%p242_p9), %s2363_s7, 208 }
   0xe   : > { %245 = sbr.rel (%p242_p9) target bundleno = 810 (0x32a), region = 48 }
   0xf   : > { %p274_p10 = scmp.lt.s32.totalorder (!%p242_p9), %s273_s15, 25  ;;  %s1605_s13 = smul.u32 (!%p242_p9), 104, %s1828_s28 }
  0x13   : > { %v301_v0 = vld [vmem:[%s2357_s1] sm:$0xff]  ;;  %vm335_vm0 = vcmask 1043456   ;;  %s2371_s15 = smov (!%p274_p10, %s273_s15), 25  ;;  %vm313_vm1 = vcmask 64512   ;;  %v1571_v10 = vld [vmem:[%s2359_s3 + $0x74] sm:$0xf] }
  0x14   : > { %v309_v1 = vunpack.c.l.b16 %v301_v0  ;;  %v310_v2 = vunpack.c.h.b16 %v301_v0  ;;  %s1347_s16 = sshll.u32 %s2371_s15, 3  ;;  %v1422_v11 = vld [vmem:[%s2359_s3 + $0x78] sm:$0xf0]  ;;  %v1587_v12 = vld [vmem:[%s2359_s3 + $0xf4] sm:$0xf] }
  0x15   : > { %s1862_s19 = scalar_lea.vmem %s2356_s0, %s1347_s16  ;;  %v1425_v13 = vor.u32 %v1571_v10, %v1422_v11  ;;  %v1486_v14 = vld [vmem:[%s2359_s3 + $0xf8] sm:$0xf0]  ;;  %v1569_v19 = vld [vmem:[%s2359_s3 + $0x64] sm:$0xf]  ;;  %v1414_v20 = vld [vmem:[%s2359_s3 + $0x68] sm:$0xf0]  ;;  %s1277_s16 = scalar_lea.hbm %s2363_s7, %s1605_s13 }
  0x16   : > { %v311_v3 = vpack.c.b16 %v309_v1, %v309_v1  ;;  %v312_v4 = vpack.c.b16 %v310_v2, %v310_v2  ;;  %v281_v7 = vld [vmem:[%s1862_s19] sm:$0xff]  ;;  %v282_v8 = vld [vmem:[%s1862_s19 + $0x8] sm:$0xff]  ;;  %v1489_v15 = vor.u32 %v1587_v12, %v1486_v14  ;;  %v283_v16 = vld [vmem:[%s1862_s19 + $0x10] sm:$0xff]  ;;  %v1417_v22 = vor.u32 %v1569_v19, %v1414_v20  ;;  %s1280_s18 = sshll.u32 %s1277_s16, 4  ;;  %s1281_s18 = int_to_ptr.hbm [resolvable:$true] %s1280_s18 }
  0x17   : > { %v294_v9 = vpack.c.bf16 %v282_v8, %v281_v7  ;;  %v284_v17 = vld [vmem:[%s1862_s19 + $0x18] sm:$0xff]  ;;  %v1585_v21 = vld [vmem:[%s2359_s3 + $0xe4] sm:$0xf]  ;;  %v1478_v23 = vld [vmem:[%s2359_s3 + $0xe8] sm:$0xf0]  ;;  %s1715_s20 = sshra.s32 %s1281_s18, 4  ;;  %s1716_s20 = int_to_ptr.hbm [resolvable:$true] %s1715_s20 }
  0x18   : > { %v337_v5 = vsel %vm335_vm0, %v311_v3, 0  ;;  %v340_v6 = vsel %vm335_vm0, %v312_v4, 0  ;;  %v295_v18 = vpack.c.bf16 %v284_v17, %v283_v16  ;;  %v1481_v24 = vor.u32 %v1585_v21, %v1478_v23  ;;  %v285_v25 = vld [vmem:[%s1862_s19 + $0x20] sm:$0xff]  ;;  %v286_v26 = vld [vmem:[%s1862_s19 + $0x28] sm:$0xff]  ;;  %v1567_v28 = vld [vmem:[%s2359_s3 + $0x54] sm:$0xf]  ;;  %p1722_p0 = scmp.lt.s32.totalorder %s1716_s20, %s2363_s7 }
  0x19   : > { %349 = vmatpush.bf16.msra.mxu0 %v337_v5  ;;  %392 = vmatpush.bf16.msra.mxu1 %v340_v6  ;;  %v296_v27 = vpack.c.bf16 %v286_v26, %v285_v25  ;;  %v1406_v29 = vld [vmem:[%s2359_s3 + $0x58] sm:$0xf0]  ;;  %v1583_v30 = vld [vmem:[%s2359_s3 + $0xd4] sm:$0xf]  ;;  %v1565_v33 = vld [vmem:[%s2359_s3 + $0x44] sm:$0xf] }
  0x1a   : > { %v1409_v31 = vor.u32 %v1567_v28, %v1406_v29  ;;  %v1470_v32 = vld [vmem:[%s2359_s3 + $0xd8] sm:$0xf0]  ;;  %v1398_v34 = vld [vmem:[%s2359_s3 + $0x48] sm:$0xf0]  ;;  %v287_v37 = vld [vmem:[%s1862_s19 + $0x30] sm:$0xff]  ;;  %s1717_s21 = scalar_lea.hbm %s1716_s20, 104 }
  0x1b   : > { %v1473_v35 = vor.u32 %v1583_v30, %v1470_v32  ;;  %v1401_v36 = vor.u32 %v1565_v33, %v1398_v34  ;;  %v288_v38 = vld [vmem:[%s1862_s19 + $0x38] sm:$0xff]  ;;  %v1581_v40 = vld [vmem:[%s2359_s3 + $0xc4] sm:$0xf]  ;;  %v1462_v41 = vld [vmem:[%s2359_s3 + $0xc8] sm:$0xf0]  ;;  %p1718_p11 = scmp.ne.s32.totalorder %s1716_s20, %s1717_s21  ;;  %p1723_p1 = scmp.lt.s32.totalorder %s1721_s29, %s1717_s21 }
  0x1c   : > { %1348 = vmatmul.msk.bf16.vlgmr.msra.gmra.mxu0 %vm313_vm1, %v294_v9  ;;  %1355 = vmatmul.msk.bf16.vlgmr.msra.gmra.mxu1 %vm313_vm1, %v294_v9  ;;  %v297_v39 = vpack.c.bf16 %v288_v38, %v287_v37  ;;  %v1563_v42 = vld [vmem:[%s2359_s3 + $0x34] sm:$0xf]  ;;  %v1465_v43 = vor.u32 %v1581_v40, %v1462_v41  ;;  %v1390_v44 = vld [vmem:[%s2359_s3 + $0x38] sm:$0xf0]  ;;  %v289_v49 = vld [vmem:[%s1862_s19 + $0x40] sm:$0xff] }
  0x1d   : > { %752 = vmatpush.bf16.msrb.mxu0 %v1425_v13  ;;  %795 = vmatpush.bf16.msrb.mxu1 %v1489_v15  ;;  %v1579_v45 = vld [vmem:[%s2359_s3 + $0xb4] sm:$0xf]  ;;  %v1454_v46 = vld [vmem:[%s2359_s3 + $0xb8] sm:$0xf0]  ;;  %v1393_v47 = vor.u32 %v1563_v42, %v1390_v44  ;;  %v290_v50 = vld [vmem:[%s1862_s19 + $0x48] sm:$0xff]  ;;  %p1719_p12 = pnand %p1718_p11, %p1845_p5  ;;  %p1724_p2 = por %p1723_p1, %p1722_p0 }
  0x1e   : > { %v1457_v48 = vor.u32 %v1579_v45, %v1454_v46  ;;  %v298_v51 = vpack.c.bf16 %v290_v50, %v289_v49  ;;  %v1561_v52 = vld [vmem:[%s2359_s3 + $0x24] sm:$0xf]  ;;  %v1382_v53 = vld [vmem:[%s2359_s3 + $0x28] sm:$0xf0]  ;;  %v1420_v57 = vld [vmem:[%s2359_s3 + $0x70] sm:$0xf] }
  0x1f   : > { %v1577_v54 = vld [vmem:[%s2359_s3 + $0xa4] sm:$0xf]  ;;  %v1385_v55 = vor.u32 %v1561_v52, %v1382_v53  ;;  %v1446_v56 = vld [vmem:[%s2359_s3 + $0xa8] sm:$0xf0]  ;;  %v1572_v58 = vld [vmem:[%s2359_s3 + $0x74] sm:$0xf0]  ;;  %p1720_p13 = pneg %p1719_p12 }
  0x20   : > { %v1449_v59 = vor.u32 %v1577_v54, %v1446_v56  ;;  %v1421_v60 = vor.u32 %v1572_v58, %v1420_v57  ;;  %v1484_v61 = vld [vmem:[%s2359_s3 + $0xf0] sm:$0xf]  ;;  %v1588_v62 = vld [vmem:[%s2359_s3 + $0xf4] sm:$0xf0]  ;;  %v1412_v63 = vld [vmem:[%s2359_s3 + $0x60] sm:$0xf] }
  0x21   : > { %753 = vmatpush.bf16.msrb.mxu0 %v1417_v22  ;;  %796 = vmatpush.bf16.msrb.mxu1 %v1481_v24  ;;  %v1485_v0 = vor.u32 %v1588_v62, %v1484_v61  ;;  %v1570_v1 = vld [vmem:[%s2359_s3 + $0x64] sm:$0xf0]  ;;  %v1476_v2 = vld [vmem:[%s2359_s3 + $0xe0] sm:$0xf]  ;;  %v1404_v5 = vld [vmem:[%s2359_s3 + $0x50] sm:$0xf]  ;;  %p1725_p3 = pnand %p1724_p2, %p1720_p13 }
  0x22   : > { %v1586_v3 = vld [vmem:[%s2359_s3 + $0xe4] sm:$0xf0]  ;;  %666 = vmatpush.bf16.msra.mxu2 %v1421_v60  ;;  %v1413_v4 = vor.u32 %v1570_v1, %v1412_v63  ;;  %v1568_v7 = vld [vmem:[%s2359_s3 + $0x54] sm:$0xf0]  ;;  %v1559_v8 = vld [vmem:[%s2359_s3 + $0x14] sm:$0xf] }
  0x23   : > { %709 = vmatpush.bf16.msra.mxu3 %v1485_v0  ;;  %v1477_v6 = vor.u32 %v1586_v3, %v1476_v2  ;;  %v1374_v9 = vld [vmem:[%s2359_s3 + $0x18] sm:$0xf0]  ;;  %v1468_v10 = vld [vmem:[%s2359_s3 + $0xd0] sm:$0xf]  ;;  %v1584_v11 = vld [vmem:[%s2359_s3 + $0xd4] sm:$0xf0]  ;;  %v1405_v15 = vor.u32 %v1568_v7, %v1404_v5 }
  0x24   : > { %v1377_v12 = vor.u32 %v1559_v8, %v1374_v9  ;;  %v1575_v13 = vld [vmem:[%s2359_s3 + $0x94] sm:$0xf]  ;;  %v1438_v14 = vld [vmem:[%s2359_s3 + $0x98] sm:$0xf0]  ;;  %v1469_v19 = vor.u32 %v1584_v11, %v1468_v10  ;;  %v1396_v20 = vld [vmem:[%s2359_s3 + $0x40] sm:$0xf] }
  0x25   : > { %754 = vmatpush.bf16.msrb.mxu0 %v1409_v31  ;;  %797 = vmatpush.bf16.msrb.mxu1 %v1473_v35  ;;  %v1441_v16 = vor.u32 %v1575_v13, %v1438_v14  ;;  %v291_v17 = vld [vmem:[%s1862_s19 + $0x50] sm:$0xff]  ;;  %v1566_v21 = vld [vmem:[%s2359_s3 + $0x44] sm:$0xf0]  ;;  %v1460_v22 = vld [vmem:[%s2359_s3 + $0xc0] sm:$0xf] }
  0x26   : > { %667 = vmatpush.bf16.msra.mxu2 %v1413_v4  ;;  %v1582_v23 = vld [vmem:[%s2359_s3 + $0xc4] sm:$0xf0]  ;;  %v1397_v25 = vor.u32 %v1566_v21, %v1396_v20  ;;  %v1388_v28 = vld [vmem:[%s2359_s3 + $0x30] sm:$0xf]  ;;  %v1564_v29 = vld [vmem:[%s2359_s3 + $0x34] sm:$0xf0] }
  0x27   : > { %710 = vmatpush.bf16.msra.mxu3 %v1477_v6  ;;  %v1461_v26 = vor.u32 %v1582_v23, %v1460_v22  ;;  %v1452_v30 = vld [vmem:[%s2359_s3 + $0xb0] sm:$0xf]  ;;  %v1389_v31 = vor.u32 %v1564_v29, %v1388_v28  ;;  %v1580_v32 = vld [vmem:[%s2359_s3 + $0xb4] sm:$0xf0]  ;;  %v1380_v35 = vld [vmem:[%s2359_s3 + $0x20] sm:$0xf] }
  0x28   : > { %v1453_v34 = vor.u32 %v1580_v32, %v1452_v30  ;;  %v1444_v38 = vld [vmem:[%s2359_s3 + $0xa0] sm:$0xf]  ;;  %v1372_v41 = vld [vmem:[%s2359_s3 + $0x10] sm:$0xf]  ;;  %v1560_v42 = vld [vmem:[%s2359_s3 + $0x14] sm:$0xf0] }
  0x29   : > { %755 = vmatpush.bf16.msrb.mxu0 %v1401_v36  ;;  %798 = vmatpush.bf16.msrb.mxu1 %v1465_v43  ;;  %v1562_v36 = vld [vmem:[%s2359_s3 + $0x24] sm:$0xf0]  ;;  %v1436_v43 = vld [vmem:[%s2359_s3 + $0x90] sm:$0xf]  ;;  %v1373_v44 = vor.u32 %v1560_v42, %v1372_v41  ;;  %v1576_v45 = vld [vmem:[%s2359_s3 + $0x94] sm:$0xf0] }
  0x2a   : > { %668 = vmatpush.bf16.msra.mxu2 %v1405_v15  ;;  %v1381_v37 = vor.u32 %v1562_v36, %v1380_v35  ;;  %v1437_v46 = vor.u32 %v1576_v45, %v1436_v43  ;;  %v1573_v49 = vld [vmem:[%s2359_s3 + $0x84] sm:$0xf]  ;;  %v1364_v52 = vld [vmem:[%s2359_s3] sm:$0xf]  ;;  %v1558_v53 = vld [vmem:[%s2359_s3 + $0x4] sm:$0xf0] }
  0x2b   : > { %711 = vmatpush.bf16.msra.mxu3 %v1469_v19  ;;  %v1428_v56 = vld [vmem:[%s2359_s3 + $0x80] sm:$0xf]  ;;  %v1574_v57 = vld [vmem:[%s2359_s3 + $0x84] sm:$0xf0]  ;;  %v1596_v14 = vld [vmem:[%s2361_s5 + $0x38] sm:$0xff] }
  0x2c   : > { %1349 = vmatmul.msk.bf16.gmra.mxu0 %vm313_vm1, %v295_v18  ;;  %1356 = vmatmul.msk.bf16.gmra.mxu1 %vm313_vm1, %v295_v18  ;;  %v292_v18 = vld [vmem:[%s1862_s19 + $0x58] sm:$0xff]  ;;  %v1429_v58 = vor.u32 %v1574_v57, %v1428_v56  ;;  %v1595_v30 = vld [vmem:[%s2361_s5 + $0x30] sm:$0xff] }
  0x2d   : > { %756 = vmatpush.bf16.msrb.mxu0 %v1393_v47  ;;  %799 = vmatpush.bf16.msrb.mxu1 %v1457_v48  ;;  %v299_v24 = vpack.c.bf16 %v292_v18, %v291_v17  ;;  %v1557_v47 = vld [vmem:[%s2359_s3 + $0x4] sm:$0xf]  ;;  %v1366_v48 = vld [vmem:[%s2359_s3 + $0x8] sm:$0xf0]  ;;  %v1604_v15 = vld [vmem:[%s2361_s5 + $0x78] sm:$0xff] }
  0x2e   : > { %669 = vmatpush.bf16.msra.mxu2 %v1397_v25  ;;  %v1369_v50 = vor.u32 %v1557_v47, %v1366_v48  ;;  %v1602_v47 = vld [vmem:[%s2361_s5 + $0x68] sm:$0xff] }
  0x2f   : > { %712 = vmatpush.bf16.msra.mxu3 %v1461_v26 }
  0x31   : > { %757 = vmatpush.bf16.msrb.mxu0 %v1385_v55  ;;  %800 = vmatpush.bf16.msrb.mxu1 %v1449_v59  ;;  %v1365_v55 = vor.u32 %v1558_v53, %v1364_v52  ;;  %v302_v59 = vld [vmem:[%s2358_s2] sm:$0x3] }
  0x32   : > { %670 = vmatpush.bf16.msra.mxu2 %v1389_v31  ;;  %v2086_v62 = vperm.slane %v302_v59, 0  ;;  %v2088_v63 = vperm.slane %v302_v59, 1  ;;  %v1603_v31 = vld [vmem:[%s2361_s5 + $0x70] sm:$0xff] }
  0x33   : > { %713 = vmatpush.bf16.msra.mxu3 %v1453_v34 }
  0x35   : > { %758 = vmatpush.bf16.msrb.mxu0 %v1377_v12  ;;  %801 = vmatpush.bf16.msrb.mxu1 %v1441_v16 }
  0x36   : > { %671 = vmatpush.bf16.msra.mxu2 %v1381_v37 }
  0x39   : > { %759 = vmatpush.bf16.msrb.mxu0 %v1369_v50 }
  0x3a   : > { %672 = vmatpush.bf16.msra.mxu2 %v1373_v44 }
  0x3c   : > { %1350 = vmatmul.msk.bf16.gmra.mxu0 %vm313_vm1, %v296_v27  ;;  %1357 = vmatmul.msk.bf16.gmra.mxu1 %vm313_vm1, %v296_v27  ;;  %v293_v27 = vld [vmem:[%s1862_s19 + $0x60] sm:$0xff]  ;;  %s270_s19 = sand.u32 1, %s1755_s25  }
  0x3d   : > { %v300_v33 = vpack.c.bf16 %v293_v27, %v293_v27  ;;  %s1606_s8 = smul.u32 104, %s270_s19  ;;  %s1266_s28 = scalar_lea.sflag [#allocation3], %s270_s19 }
  0x3e   : > { %673 = vmatpush.bf16.msra.mxu2 %v1365_v55 }
  0x3f   : > { %s2295_s9 = scalar_lea.vmem [#allocation2], %s1606_s8 }
  0x40   : > { %s1278_s17 = sshll.u32 %s2295_s9, 4  ;;  %s1279_s17 = int_to_ptr.vmem [resolvable:$true] %s1278_s17 }
  0x42   : > { %1010 = vmatpush.bf16.msrb.mxu2 %v1596_v14 }
  0x46   : > { %1011 = vmatpush.bf16.msrb.mxu2 %v1595_v30 }
  0x4c   : > { %1351 = vmatmul.msk.bf16.gmra.mxu0 %vm313_vm1, %v297_v39  ;;  %1358 = vmatmul.msk.bf16.gmra.mxu1 %vm313_vm1, %v297_v39  ;;  %v1578_v39 = vld [vmem:[%s2359_s3 + $0xa4] sm:$0xf0] }
  0x4d   : > { %v1445_v40 = vor.u32 %v1578_v39, %v1444_v38 }
  0x4f   : > { %714 = vmatpush.bf16.msra.mxu3 %v1445_v40 }
  0x53   : > { %715 = vmatpush.bf16.msra.mxu3 %v1437_v46  ;;  %v1594_v46 = vld [vmem:[%s2361_s5 + $0x28] sm:$0xff] }
  0x54   : > { %1012 = vmatpush.bf16.msrb.mxu2 %v1594_v46 }
  0x57   : > { %716 = vmatpush.bf16.msra.mxu3 %v1429_v58  ;;  %v1593_v58 = vld [vmem:[%s2361_s5 + $0x20] sm:$0xff] }
  0x58   : > { %1013 = vmatpush.bf16.msrb.mxu2 %v1593_v58 }
  0x5b   : > { %1053 = vmatpush.bf16.msrb.mxu3 %v1604_v15 }
  0x5c   : > { %1352 = vmatmul.msk.bf16.gmra.mxu0 %vm313_vm1, %v298_v51  ;;  %1359 = vmatmul.msk.bf16.gmra.mxu1 %vm313_vm1, %v298_v51  ;;  %v1430_v51 = vld [vmem:[%s2359_s3 + $0x88] sm:$0xf0] }
  0x5d   : > { %v1433_v54 = vor.u32 %v1573_v49, %v1430_v51 }
  0x5f   : > { %802 = vmatpush.bf16.msrb.mxu1 %v1433_v54  ;;  %1054 = vmatpush.bf16.msrb.mxu3 %v1603_v31 }
  0x63   : > { %1055 = vmatpush.bf16.msrb.mxu3 %v1602_v47 }
  0x6c   : > { %1353 = vmatmul.msk.bf16.gmra.mxu0 %vm313_vm1, %v299_v24  ;;  %1360 = vmatmul.msk.bf16.gmra.mxu1 %vm313_vm1, %v299_v24 }
  0x7c   : > { %1354 = vmatmul.msk.bf16.gmra.mxu0 %vm313_vm1, %v300_v33  ;;  %1361 = vmatmul.msk.bf16.gmra.mxu1 %vm313_vm1, %v300_v33 }
  0x99   : > { %v351_v60 = vpop.f32.mrf.mxu0  ;;  %v394_v61 = vpop.f32.mrf.mxu1 }
  0x9a   : > { %v352_v0 = vadd.f32 %v351_v60, %v2086_v62  ;;  %v395_v1 = vadd.f32 %v394_v61, %v2088_v63 }
  0x9c   : > { %v428_v6 = vmax.f32 %v352_v0, 0.0  ;;  %v429_v7 = vmax.f32 %v395_v1, 0.0  ;;  %v1601_v1 = vld [vmem:[%s2361_s5 + $0x60] sm:$0xff] }
  0x9d   : > { %1056 = vmatpush.bf16.msrb.mxu3 %v1601_v1 }
  0xa1   : > { %v353_v2 = vpop.f32.mrf.mxu0  ;;  %v396_v3 = vpop.f32.mrf.mxu1 }
  0xa2   : > { %v354_v4 = vadd.f32 %v353_v2, %v2086_v62  ;;  %v397_v5 = vadd.f32 %v396_v3, %v2088_v63  ;;  %v1592_v2 = vld [vmem:[%s2361_s5 + $0x18] sm:$0xff] }
  0xa3   : > { %v1600_v3 = vld [vmem:[%s2361_s5 + $0x58] sm:$0xff]  ;;  %1014 = vmatpush.bf16.msrb.mxu2 %v1592_v2 }
  0xa4   : > { %v430_v8 = vmax.f32 %v354_v4, 0.0  ;;  %v431_v9 = vmax.f32 %v397_v5, 0.0  ;;  %1057 = vmatpush.bf16.msrb.mxu3 %v1600_v3 }
  0xa6   : > { %v454_v10 = vpack.c.bf16 %v430_v8, %v428_v6  ;;  %v455_v11 = vpack.c.bf16 %v431_v9, %v429_v7 }
  0xa8   : > { %674 = vmatmul.bf16.vlgmr.msra.gmra.mxu2 %v454_v10  ;;  %717 = vmatmul.bf16.vlgmr.msra.gmra.mxu3 %v455_v11 }
  0xa9   : > { %760 = vmatmul.bf16.vlgmr.msrb.gmra.mxu0 %v454_v10  ;;  %803 = vmatmul.bf16.vlgmr.msrb.gmra.mxu1 %v455_v11  ;;  %v356_v12 = vpop.f32.mrf.mxu0  ;;  %v399_v13 = vpop.f32.mrf.mxu1 }
  0xaa   : > { %v357_v16 = vadd.f32 %v356_v12, %v2086_v62  ;;  %v400_v17 = vadd.f32 %v399_v13, %v2088_v63 }
  0xac   : > { %v432_v22 = vmax.f32 %v357_v16, 0.0  ;;  %v433_v23 = vmax.f32 %v400_v17, 0.0 }
  0xb1   : > { %v358_v18 = vpop.f32.mrf.mxu0  ;;  %v401_v19 = vpop.f32.mrf.mxu1 }
  0xb2   : > { %v359_v20 = vadd.f32 %v358_v18, %v2086_v62  ;;  %v402_v21 = vadd.f32 %v401_v19, %v2088_v63  ;;  %v1591_v18 = vld [vmem:[%s2361_s5 + $0x10] sm:$0xff] }
  0xb3   : > { %v1599_v19 = vld [vmem:[%s2361_s5 + $0x50] sm:$0xff]  ;;  %1015 = vmatpush.bf16.msrb.mxu2 %v1591_v18 }
  0xb4   : > { %v434_v24 = vmax.f32 %v359_v20, 0.0  ;;  %v435_v25 = vmax.f32 %v402_v21, 0.0  ;;  %1058 = vmatpush.bf16.msrb.mxu3 %v1599_v19  ;;  %v1590_v20 = vld [vmem:[%s2361_s5 + $0x8] sm:$0xff] }
  0xb5   : > { %v1598_v21 = vld [vmem:[%s2361_s5 + $0x48] sm:$0xff] }
  0xb6   : > { %v456_v26 = vpack.c.bf16 %v434_v24, %v432_v22  ;;  %v457_v27 = vpack.c.bf16 %v435_v25, %v433_v23 }
  0xb7   : > { %1016 = vmatpush.bf16.msrb.mxu2 %v1590_v20 }
  0xb8   : > { %679 = vmatmul.bf16.gmra.mxu2 %v456_v26  ;;  %722 = vmatmul.bf16.gmra.mxu3 %v457_v27 }
  0xb9   : > { %765 = vmatmul.bf16.gmra.mxu0 %v456_v26  ;;  %808 = vmatmul.bf16.gmra.mxu1 %v457_v27  ;;  %v361_v28 = vpop.f32.mrf.mxu0  ;;  %v404_v29 = vpop.f32.mrf.mxu1 }
  0xba   : > { %v362_v32 = vadd.f32 %v361_v28, %v2086_v62  ;;  %v405_v33 = vadd.f32 %v404_v29, %v2088_v63  ;;  %1059 = vmatpush.bf16.msrb.mxu3 %v1598_v21 }
  0xbc   : > { %v436_v38 = vmax.f32 %v362_v32, 0.0  ;;  %v437_v39 = vmax.f32 %v405_v33, 0.0 }
  0xc1   : > { %v363_v34 = vpop.f32.mrf.mxu0  ;;  %v406_v35 = vpop.f32.mrf.mxu1 }
  0xc2   : > { %v364_v36 = vadd.f32 %v363_v34, %v2086_v62  ;;  %v407_v37 = vadd.f32 %v406_v35, %v2088_v63 }
  0xc4   : > { %v438_v40 = vmax.f32 %v364_v36, 0.0  ;;  %v439_v41 = vmax.f32 %v407_v37, 0.0 }
  0xc6   : > { %v458_v42 = vpack.c.bf16 %v438_v40, %v436_v38  ;;  %v459_v43 = vpack.c.bf16 %v439_v41, %v437_v39 }
  0xc8   : > { %684 = vmatmul.bf16.gmra.mxu2 %v458_v42  ;;  %727 = vmatmul.bf16.gmra.mxu3 %v459_v43 }
  0xc9   : > { %770 = vmatmul.bf16.gmra.mxu0 %v458_v42  ;;  %813 = vmatmul.bf16.gmra.mxu1 %v459_v43  ;;  %v366_v44 = vpop.f32.mrf.mxu0  ;;  %v409_v45 = vpop.f32.mrf.mxu1 }
  0xca   : > { %v367_v48 = vadd.f32 %v366_v44, %v2086_v62  ;;  %v410_v49 = vadd.f32 %v409_v45, %v2088_v63  ;;  %v1597_v44 = vld [vmem:[%s2361_s5 + $0x40] sm:$0xff] }
  0xcb   : > { %1060 = vmatpush.bf16.msrb.mxu3 %v1597_v44 }
  0xcc   : > { %v440_v54 = vmax.f32 %v367_v48, 0.0  ;;  %v441_v55 = vmax.f32 %v410_v49, 0.0 }
  0xd1   : > { %v368_v50 = vpop.f32.mrf.mxu0  ;;  %v411_v51 = vpop.f32.mrf.mxu1 }
  0xd2   : > { %v369_v52 = vadd.f32 %v368_v50, %v2086_v62  ;;  %v412_v53 = vadd.f32 %v411_v51, %v2088_v63 }
  0xd4   : > { %v442_v56 = vmax.f32 %v369_v52, 0.0  ;;  %v443_v57 = vmax.f32 %v412_v53, 0.0 }
  0xd6   : > { %v460_v59 = vpack.c.bf16 %v442_v56, %v440_v54  ;;  %v461_v60 = vpack.c.bf16 %v443_v57, %v441_v55 }
  0xd8   : > { %689 = vmatmul.bf16.gmra.mxu2 %v460_v59  ;;  %732 = vmatmul.bf16.gmra.mxu3 %v461_v60 }
  0xd9   : > { %775 = vmatmul.bf16.gmra.mxu0 %v460_v59  ;;  %818 = vmatmul.bf16.gmra.mxu1 %v461_v60  ;;  %v371_v61 = vpop.f32.mrf.mxu0  ;;  %v414_v0 = vpop.f32.mrf.mxu1 }
  0xda   : > { %v372_v4 = vadd.f32 %v371_v61, %v2086_v62  ;;  %v415_v5 = vadd.f32 %v414_v0, %v2088_v63 }
  0xdc   : > { %v444_v10 = vmax.f32 %v372_v4, 0.0  ;;  %v445_v11 = vmax.f32 %v415_v5, 0.0 }
  0xe1   : > { %v373_v6 = vpop.f32.mrf.mxu0  ;;  %v416_v7 = vpop.f32.mrf.mxu1 }
  0xe2   : > { %v374_v8 = vadd.f32 %v373_v6, %v2086_v62  ;;  %v417_v9 = vadd.f32 %v416_v7, %v2088_v63 }
  0xe4   : > { %v446_v12 = vmax.f32 %v374_v8, 0.0  ;;  %v447_v13 = vmax.f32 %v417_v9, 0.0 }
  0xe6   : > { %v462_v14 = vpack.c.bf16 %v446_v12, %v444_v10  ;;  %v463_v15 = vpack.c.bf16 %v447_v13, %v445_v11 }
  0xe8   : > { %694 = vmatmul.bf16.gmra.mxu2 %v462_v14  ;;  %737 = vmatmul.bf16.gmra.mxu3 %v463_v15 }
  0xe9   : > { %780 = vmatmul.bf16.gmra.mxu0 %v462_v14  ;;  %823 = vmatmul.bf16.gmra.mxu1 %v463_v15  ;;  %v376_v16 = vpop.f32.mrf.mxu0  ;;  %v419_v17 = vpop.f32.mrf.mxu1 }
  0xea   : > { %v377_v22 = vadd.f32 %v376_v16, %v2086_v62  ;;  %v420_v23 = vadd.f32 %v419_v17, %v2088_v63 }
  0xec   : > { %v448_v28 = vmax.f32 %v377_v22, 0.0  ;;  %v449_v29 = vmax.f32 %v420_v23, 0.0 }
  0xf1   : > { %v378_v24 = vpop.f32.mrf.mxu0  ;;  %v421_v25 = vpop.f32.mrf.mxu1 }
  0xf2   : > { %v379_v26 = vadd.f32 %v378_v24, %v2086_v62  ;;  %v422_v27 = vadd.f32 %v421_v25, %v2088_v63 }
  0xf4   : > { %v450_v30 = vmax.f32 %v379_v26, 0.0  ;;  %v451_v31 = vmax.f32 %v422_v27, 0.0 }
  0xf6   : > { %v464_v32 = vpack.c.bf16 %v450_v30, %v448_v28  ;;  %v465_v33 = vpack.c.bf16 %v451_v31, %v449_v29 }
  0xf8   : > { %699 = vmatmul.bf16.gmra.mxu2 %v464_v32  ;;  %742 = vmatmul.bf16.gmra.mxu3 %v465_v33 }
  0xf9   : > { %785 = vmatmul.bf16.gmra.mxu0 %v464_v32  ;;  %828 = vmatmul.bf16.gmra.mxu1 %v465_v33  ;;  %v381_v34 = vpop.f32.mrf.mxu0  ;;  %v424_v35 = vpop.f32.mrf.mxu1 }
  0xfa   : > { %v382_v36 = vadd.f32 %v381_v34, %v2086_v62  ;;  %v425_v37 = vadd.f32 %v424_v35, %v2088_v63  ;;  %v1589_v62 = vld [vmem:[%s2361_s5] sm:$0xff] }
  0xfb   : > { %1017 = vmatpush.bf16.msrb.mxu2 %v1589_v62  ;;  %v500_v63 = vld [vmem:[%s2360_s4] sm:$0x3] }
  0xfc   : > { %v452_v38 = vmax.f32 %v382_v36, 0.0  ;;  %v453_v39 = vmax.f32 %v425_v37, 0.0  ;;  %v2167_v47 = vperm.slane %v500_v63, 1  ;;  %v2170_v51 = vperm.slane %v500_v63, 0 }
  0xfe   : > { %v466_v42 = vpack.c.bf16 %v452_v38, %v452_v38  ;;  %v467_v43 = vpack.c.bf16 %v453_v39, %v453_v39 }
 0x101   : > { %v383_v40 = vpop.f32.mrf.mxu0  ;;  %v426_v41 = vpop.f32.mrf.mxu1 }
 0x108   : > { %704 = vmatmul.bf16.gmra.mxu2 %v466_v42  ;;  %747 = vmatmul.bf16.gmra.mxu3 %v467_v43 }
 0x109   : > { %790 = vmatmul.bf16.gmra.mxu0 %v466_v42  ;;  %833 = vmatmul.bf16.gmra.mxu1 %v467_v43 }
 0x126   : > { %v761_v45 = vpop.f32.mrf.mxu0  ;;  %v804_v46 = vpop.f32.mrf.mxu1 }
 0x127   : > { %v762_v48 = vadd.f32 %v761_v45, %v2167_v47 }
 0x129   : > { %v805_v54 = vadd.f32 %v804_v46, %v762_v48 }
 0x12b   : > { %v675_v49 = vpop.f32.mrf.mxu2  ;;  %v718_v50 = vpop.f32.mrf.mxu3  ;;  %v839_v58 = vmax.f32 %v805_v54, 0.0 }
 0x12c   : > { %v676_v56 = vadd.f32 %v675_v49, %v2170_v51 }
 0x12e   : > { %v763_v52 = vpop.f32.mrf.mxu0  ;;  %v806_v53 = vpop.f32.mrf.mxu1  ;;  %v719_v0 = vadd.f32 %v718_v50, %v676_v56 }
 0x12f   : > { %v764_v55 = vadd.f32 %v763_v52, %v2167_v47 }
 0x130   : > { %v838_v6 = vmax.f32 %v719_v0, 0.0 }
 0x131   : > { %v807_v57 = vadd.f32 %v806_v53, %v764_v55 }
 0x133   : > { %v841_v59 = vmax.f32 %v807_v57, 0.0  ;;  %v677_v60 = vpop.f32.mrf.mxu2  ;;  %v720_v61 = vpop.f32.mrf.mxu3 }
 0x134   : > { %v678_v1 = vadd.f32 %v677_v60, %v2170_v51 }
 0x135   : > { %v865_v2 = vpack.c.bf16 %v841_v59, %v839_v58 }
 0x136   : > { %v721_v3 = vadd.f32 %v720_v61, %v678_v1  ;;  %v766_v4 = vpop.f32.mrf.mxu0  ;;  %v809_v5 = vpop.f32.mrf.mxu1 }
 0x137   : > { %1061 = vmatmul.bf16.vlgmr.msrb.gmra.mxu3 %v865_v2  ;;  %v767_v9 = vadd.f32 %v766_v4, %v2167_v47 }
 0x138   : > { %v840_v7 = vmax.f32 %v721_v3, 0.0 }
 0x139   : > { %v810_v14 = vadd.f32 %v809_v5, %v767_v9 }
 0x13a   : > { %v864_v8 = vpack.c.bf16 %v840_v7, %v838_v6 }
 0x13b   : > { %v680_v10 = vpop.f32.mrf.mxu2  ;;  %v723_v11 = vpop.f32.mrf.mxu3  ;;  %v843_v18 = vmax.f32 %v810_v14, 0.0 }
 0x13c   : > { %1018 = vmatmul.bf16.vlgmr.msrb.gmra.mxu2 %v864_v8  ;;  %v681_v16 = vadd.f32 %v680_v10, %v2170_v51 }
 0x13e   : > { %v768_v12 = vpop.f32.mrf.mxu0  ;;  %v811_v13 = vpop.f32.mrf.mxu1  ;;  %v724_v22 = vadd.f32 %v723_v11, %v681_v16 }
 0x13f   : > { %v769_v15 = vadd.f32 %v768_v12, %v2167_v47 }
 0x140   : > { %v842_v28 = vmax.f32 %v724_v22, 0.0 }
 0x141   : > { %v812_v17 = vadd.f32 %v811_v13, %v769_v15 }
 0x143   : > { %v845_v19 = vmax.f32 %v812_v17, 0.0  ;;  %v682_v20 = vpop.f32.mrf.mxu2  ;;  %v725_v21 = vpop.f32.mrf.mxu3 }
 0x144   : > { %v683_v23 = vadd.f32 %v682_v20, %v2170_v51 }
 0x145   : > { %v867_v24 = vpack.c.bf16 %v845_v19, %v843_v18 }
 0x146   : > { %v726_v25 = vadd.f32 %v725_v21, %v683_v23  ;;  %v771_v26 = vpop.f32.mrf.mxu0  ;;  %v814_v27 = vpop.f32.mrf.mxu1 }
 0x147   : > { %1066 = vmatmul.bf16.gmra.mxu3 %v867_v24  ;;  %v772_v31 = vadd.f32 %v771_v26, %v2167_v47 }
 0x148   : > { %v844_v29 = vmax.f32 %v726_v25, 0.0 }
 0x149   : > { %v815_v36 = vadd.f32 %v814_v27, %v772_v31 }
 0x14a   : > { %v866_v30 = vpack.c.bf16 %v844_v29, %v842_v28 }
 0x14b   : > { %v685_v32 = vpop.f32.mrf.mxu2  ;;  %v728_v33 = vpop.f32.mrf.mxu3  ;;  %v847_v40 = vmax.f32 %v815_v36, 0.0 }
 0x14c   : > { %1023 = vmatmul.bf16.gmra.mxu2 %v866_v30  ;;  %v686_v38 = vadd.f32 %v685_v32, %v2170_v51 }
 0x14e   : > { %v773_v34 = vpop.f32.mrf.mxu0  ;;  %v816_v35 = vpop.f32.mrf.mxu1  ;;  %v729_v44 = vadd.f32 %v728_v33, %v686_v38 }
 0x14f   : > { %v774_v37 = vadd.f32 %v773_v34, %v2167_v47 }
 0x150   : > { %v846_v49 = vmax.f32 %v729_v44, 0.0 }
 0x151   : > { %v817_v39 = vadd.f32 %v816_v35, %v774_v37 }
 0x153   : > { %v849_v41 = vmax.f32 %v817_v39, 0.0  ;;  %v687_v42 = vpop.f32.mrf.mxu2  ;;  %v730_v43 = vpop.f32.mrf.mxu3 }
 0x154   : > { %v688_v62 = vadd.f32 %v687_v42, %v2170_v51 }
 0x155   : > { %v869_v63 = vpack.c.bf16 %v849_v41, %v847_v40 }
 0x156   : > { %v731_v45 = vadd.f32 %v730_v43, %v688_v62  ;;  %v776_v46 = vpop.f32.mrf.mxu0  ;;  %v819_v48 = vpop.f32.mrf.mxu1 }
 0x157   : > { %1071 = vmatmul.bf16.gmra.mxu3 %v869_v63  ;;  %v777_v53 = vadd.f32 %v776_v46, %v2167_v47 }
 0x158   : > { %v848_v50 = vmax.f32 %v731_v45, 0.0 }
 0x159   : > { %v820_v58 = vadd.f32 %v819_v48, %v777_v53 }
 0x15a   : > { %v868_v52 = vpack.c.bf16 %v848_v50, %v846_v49 }
 0x15b   : > { %v690_v54 = vpop.f32.mrf.mxu2  ;;  %v733_v55 = vpop.f32.mrf.mxu3  ;;  %v851_v0 = vmax.f32 %v820_v58, 0.0 }
 0x15c   : > { %1028 = vmatmul.bf16.gmra.mxu2 %v868_v52  ;;  %v691_v60 = vadd.f32 %v690_v54, %v2170_v51 }
 0x15e   : > { %v778_v56 = vpop.f32.mrf.mxu0  ;;  %v821_v57 = vpop.f32.mrf.mxu1  ;;  %v734_v4 = vadd.f32 %v733_v55, %v691_v60 }
 0x15f   : > { %v779_v59 = vadd.f32 %v778_v56, %v2167_v47 }
 0x160   : > { %v850_v10 = vmax.f32 %v734_v4, 0.0 }
 0x161   : > { %v822_v61 = vadd.f32 %v821_v57, %v779_v59 }
 0x163   : > { %v853_v1 = vmax.f32 %v822_v61, 0.0  ;;  %v692_v2 = vpop.f32.mrf.mxu2  ;;  %v735_v3 = vpop.f32.mrf.mxu3 }
 0x164   : > { %v693_v5 = vadd.f32 %v692_v2, %v2170_v51 }
 0x165   : > { %v871_v6 = vpack.c.bf16 %v853_v1, %v851_v0 }
 0x166   : > { %v736_v7 = vadd.f32 %v735_v3, %v693_v5  ;;  %v781_v8 = vpop.f32.mrf.mxu0  ;;  %v824_v9 = vpop.f32.mrf.mxu1 }
 0x167   : > { %1076 = vmatmul.bf16.gmra.mxu3 %v871_v6  ;;  %v782_v13 = vadd.f32 %v781_v8, %v2167_v47 }
 0x168   : > { %v852_v11 = vmax.f32 %v736_v7, 0.0 }
 0x169   : > { %v825_v18 = vadd.f32 %v824_v9, %v782_v13  ;;  %v1648_v9 = vld [vmem:[%s2362_s6] ss:$0 sm:$0xff] }
 0x16a   : > { %v870_v12 = vpack.c.bf16 %v852_v11, %v850_v10 }
 0x16b   : > { %v695_v14 = vpop.f32.mrf.mxu2  ;;  %v738_v15 = vpop.f32.mrf.mxu3  ;;  %v855_v22 = vmax.f32 %v825_v18, 0.0 }
 0x16c   : > { %1033 = vmatmul.bf16.gmra.mxu2 %v870_v12  ;;  %v696_v20 = vadd.f32 %v695_v14, %v2170_v51 }
 0x16e   : > { %v783_v16 = vpop.f32.mrf.mxu0  ;;  %v826_v17 = vpop.f32.mrf.mxu1  ;;  %v739_v26 = vadd.f32 %v738_v15, %v696_v20 }
 0x16f   : > { %v784_v19 = vadd.f32 %v783_v16, %v2167_v47 }
 0x170   : > { %v854_v32 = vmax.f32 %v739_v26, 0.0 }
 0x171   : > { %v827_v21 = vadd.f32 %v826_v17, %v784_v19 }
 0x173   : > { %v857_v23 = vmax.f32 %v827_v21, 0.0  ;;  %v697_v24 = vpop.f32.mrf.mxu2  ;;  %v740_v25 = vpop.f32.mrf.mxu3 }
 0x174   : > { %v698_v27 = vadd.f32 %v697_v24, %v2170_v51 }
 0x175   : > { %v873_v28 = vpack.c.bf16 %v857_v23, %v855_v22 }
 0x176   : > { %v741_v29 = vadd.f32 %v740_v25, %v698_v27  ;;  %v786_v30 = vpop.f32.mrf.mxu0  ;;  %v829_v31 = vpop.f32.mrf.mxu1 }
 0x177   : > { %1081 = vmatmul.bf16.gmra.mxu3 %v873_v28  ;;  %v787_v35 = vadd.f32 %v786_v30, %v2167_v47 }
 0x178   : > { %v856_v33 = vmax.f32 %v741_v29, 0.0 }
 0x179   : > { %v830_v40 = vadd.f32 %v829_v31, %v787_v35 }
 0x17a   : > { %v872_v34 = vpack.c.bf16 %v856_v33, %v854_v32 }
 0x17b   : > { %v700_v36 = vpop.f32.mrf.mxu2  ;;  %v743_v37 = vpop.f32.mrf.mxu3  ;;  %v859_v44 = vmax.f32 %v830_v40, 0.0 }
 0x17c   : > { %1038 = vmatmul.bf16.gmra.mxu2 %v872_v34  ;;  %v701_v42 = vadd.f32 %v700_v36, %v2170_v51 }
 0x17e   : > { %v788_v38 = vpop.f32.mrf.mxu0  ;;  %v831_v39 = vpop.f32.mrf.mxu1  ;;  %v744_v46 = vadd.f32 %v743_v37, %v701_v42 }
 0x17f   : > { %v789_v41 = vadd.f32 %v788_v38, %v2167_v47 }
 0x180   : > { %v858_v55 = vmax.f32 %v744_v46, 0.0 }
 0x181   : > { %v832_v43 = vadd.f32 %v831_v39, %v789_v41 }
 0x183   : > { %v861_v62 = vmax.f32 %v832_v43, 0.0  ;;  %v702_v63 = vpop.f32.mrf.mxu2  ;;  %v745_v45 = vpop.f32.mrf.mxu3 }
 0x184   : > { %v703_v48 = vadd.f32 %v702_v63, %v2170_v51 }
 0x185   : > { %v875_v49 = vpack.c.bf16 %v861_v62, %v859_v44 }
 0x186   : > { %v746_v50 = vadd.f32 %v745_v45, %v703_v48  ;;  %v791_v52 = vpop.f32.mrf.mxu0  ;;  %v834_v53 = vpop.f32.mrf.mxu1 }
 0x187   : > { %v792_v54 = vadd.f32 %v791_v52, %v2167_v47  ;;  %1086 = vmatmul.bf16.gmra.mxu3 %v875_v49 }
 0x188   : > { %v860_v56 = vmax.f32 %v746_v50, 0.0 }
 0x189   : > { %v835_v58 = vadd.f32 %v834_v53, %v792_v54 }
 0x18a   : > { %v874_v57 = vpack.c.bf16 %v860_v56, %v858_v55 }
 0x18b   : > { %v705_v59 = vpop.f32.mrf.mxu2  ;;  %v748_v60 = vpop.f32.mrf.mxu3  ;;  %v863_v2 = vmax.f32 %v835_v58, 0.0 }
 0x18c   : > { %v706_v61 = vadd.f32 %v705_v59, %v2170_v51  ;;  %1043 = vmatmul.bf16.gmra.mxu2 %v874_v57 }
 0x18d   : > { %v877_v4 = vpack.c.bf16 %v863_v2, %v863_v2 }
 0x18e   : > { %v793_v0 = vpop.f32.mrf.mxu0  ;;  %v836_v1 = vpop.f32.mrf.mxu1  ;;  %v749_v3 = vadd.f32 %v748_v60, %v706_v61 }
 0x190   : > { %v862_v7 = vmax.f32 %v749_v3, 0.0 }
 0x192   : > { %v876_v47 = vpack.c.bf16 %v862_v7, %v862_v7 }
 0x193   : > { %v707_v5 = vpop.f32.mrf.mxu2  ;;  %v750_v6 = vpop.f32.mrf.mxu3 }
 0x197   : > { %1091 = vmatmul.bf16.gmra.mxu3 %v877_v4 }
 0x19c   : > { %1048 = vmatmul.bf16.gmra.mxu2 %v876_v47 }
 0x1ba   : > { %v1062_v8 = vpop.f32.mrf.mxu3 }
 0x1bf   : > { %v1019_v10 = vpop.f32.mrf.mxu2 }
 0x1c0   : > { %v1020_v11 = vadd.f32 %v1648_v9, %v1019_v10 }
 0x1c2   : > { %v1064_v51 = vpop.f32.mrf.mxu3  ;;  %v2200_v12 = vadd.f32 %v1062_v8, %v1020_v11 }
 0x1c4   : > { %1096 = vmax.xlane.f32.xlu0 %v2200_v12 }
 0x1c7   : > { %v1021_v13 = vpop.f32.mrf.mxu2 }
 0x1c8   : > { %v1022_v14 = vadd.f32 %v1648_v9, %v1021_v13 }
 0x1ca   : > { %v1067_v15 = vpop.f32.mrf.mxu3  ;;  %v2203_v16 = vadd.f32 %v1064_v51, %v1022_v14 }
 0x1cc   : > { %1098 = vmax.xlane.f32.xlu0 %v2203_v16 }
 0x1cf   : > { %v1024_v17 = vpop.f32.mrf.mxu2 }
 0x1d0   : > { %v1025_v18 = vadd.f32 %v1648_v9, %v1024_v17 }
 0x1d2   : > { %v1069_v19 = vpop.f32.mrf.mxu3  ;;  %v2206_v20 = vadd.f32 %v1067_v15, %v1025_v18 }
 0x1d4   : > { %1100 = vmax.xlane.f32.xlu1 %v2206_v20 }
 0x1d7   : > { %v1026_v21 = vpop.f32.mrf.mxu2 }
 0x1d8   : > { %v1027_v22 = vadd.f32 %v1648_v9, %v1026_v21 }
 0x1da   : > { %v1072_v23 = vpop.f32.mrf.mxu3  ;;  %v2209_v24 = vadd.f32 %v1069_v19, %v1027_v22 }
 0x1dc   : > { %1102 = vmax.xlane.f32.xlu1 %v2209_v24 }
 0x1df   : > { %v1029_v25 = vpop.f32.mrf.mxu2 }
 0x1e0   : > { %v1030_v26 = vadd.f32 %v1648_v9, %v1029_v25 }
 0x1e2   : > { %v1074_v27 = vpop.f32.mrf.mxu3  ;;  %v2212_v28 = vadd.f32 %v1072_v23, %v1030_v26 }
 0x1e4   : > { %1104 = vmax.xlane.f32.xlu2 %v2212_v28 }
 0x1e7   : > { %v1031_v29 = vpop.f32.mrf.mxu2 }
 0x1e8   : > { %v1032_v30 = vadd.f32 %v1648_v9, %v1031_v29 }
 0x1ea   : > { %v1077_v31 = vpop.f32.mrf.mxu3  ;;  %v2215_v32 = vadd.f32 %v1074_v27, %v1032_v30 }
 0x1ec   : > { %1106 = vmax.xlane.f32.xlu2 %v2215_v32 }
 0x1ef   : > { %v1034_v33 = vpop.f32.mrf.mxu2 }
 0x1f0   : > { %v1035_v34 = vadd.f32 %v1648_v9, %v1034_v33 }
 0x1f2   : > { %v1079_v35 = vpop.f32.mrf.mxu3  ;;  %v2218_v36 = vadd.f32 %v1077_v31, %v1035_v34 }
 0x1f4   : > { %1108 = vmax.xlane.f32.xlu0 %v2218_v36 }
 0x1f7   : > { %v1036_v37 = vpop.f32.mrf.mxu2 }
 0x1f8   : > { %v1037_v38 = vadd.f32 %v1648_v9, %v1036_v37 }
 0x1fa   : > { %v1082_v39 = vpop.f32.mrf.mxu3  ;;  %v2221_v40 = vadd.f32 %v1079_v35, %v1037_v38 }
 0x1fc   : > { %1110 = vmax.xlane.f32.xlu1 %v2221_v40 }
 0x1ff   : > { %v1039_v41 = vpop.f32.mrf.mxu2 }
 0x200   : > { %v1040_v42 = vadd.f32 %v1648_v9, %v1039_v41 }
 0x202   : > { %v1084_v43 = vpop.f32.mrf.mxu3  ;;  %v2224_v44 = vadd.f32 %v1082_v39, %v1040_v42 }
 0x204   : > { %1112 = vmax.xlane.f32.xlu2 %v2224_v44 }
 0x207   : > { %v1041_v62 = vpop.f32.mrf.mxu2 }
 0x208   : > { %v1042_v63 = vadd.f32 %v1648_v9, %v1041_v62 }
 0x20a   : > { %v1087_v45 = vpop.f32.mrf.mxu3  ;;  %v2227_v46 = vadd.f32 %v1084_v43, %v1042_v63 }
 0x20c   : > { %1114 = vmax.xlane.f32.xlu0 %v2227_v46 }
 0x20f   : > { %v1044_v48 = vpop.f32.mrf.mxu2 }
 0x210   : > { %v1045_v49 = vadd.f32 %v1648_v9, %v1044_v48 }
 0x212   : > { %v1089_v50 = vpop.f32.mrf.mxu3  ;;  %v2230_v52 = vadd.f32 %v1087_v45, %v1045_v49 }
 0x214   : > { %1116 = vmax.xlane.f32.xlu1 %v2230_v52 }
 0x217   : > { %v1046_v53 = vpop.f32.mrf.mxu2 }
 0x218   : > { %v1047_v54 = vadd.f32 %v1648_v9, %v1046_v53 }
 0x21a   : > { %v1092_v55 = vpop.f32.mrf.mxu3  ;;  %v2233_v56 = vadd.f32 %v1089_v50, %v1047_v54 }
 0x21c   : > { %1118 = vmax.xlane.f32.xlu2 %v2233_v56 }
 0x21f   : > { %v1049_v57 = vpop.f32.mrf.mxu2 }
 0x220   : > { %v1050_v58 = vadd.f32 %v1648_v9, %v1049_v57 }
 0x222   : > { %v1094_v59 = vpop.f32.mrf.mxu3  ;;  %v2236_v60 = vadd.f32 %v1092_v55, %v1050_v58 }
 0x224   : > { %1120 = vmax.xlane.f32.xlu0 %v2236_v60 }
 0x227   : > { %v1051_v61 = vpop.f32.mrf.mxu2 }
 0x237   : > { %v1097_v0 = vpop.xlane.xlu0 %1096 }
 0x238   : > { %v1122_v1 = vsub.f32 %v2200_v12, %v1097_v0 }
 0x23a   : > { %v1135_v2 = vmul.f32 1.442695, %v1122_v1 }
 0x23c   : > { %1649 = vpow2.f32 %v1135_v2 }
 0x23f   : > { %v1099_v3 = vpop.xlane.xlu0 %1098 }
 0x240   : > { %v1123_v4 = vsub.f32 %v2203_v16, %v1099_v3 }
 0x242   : > { %v2241_v5 = vpop.eup %1649  ;;  %v1137_v6 = vmul.f32 1.442695, %v1123_v4 }
 0x243   : > { %1161 = vadd.xlane.f32.xlu1 %v2241_v5 }
 0x244   : > { %1651 = vpow2.f32 %v1137_v6 }
 0x247   : > { %v1101_v7 = vpop.xlane.xlu1 %1100 }
 0x248   : > { %v1124_v47 = vsub.f32 %v2206_v20, %v1101_v7 }
 0x24a   : > { %v2245_v8 = vpop.eup %1651  ;;  %v1139_v9 = vmul.f32 1.442695, %v1124_v47 }
 0x24b   : > { %1163 = vadd.xlane.f32.xlu2 %v2245_v8 }
 0x24c   : > { %1653 = vpow2.f32 %v1139_v9 }
 0x24f   : > { %v1103_v10 = vpop.xlane.xlu1 %1102 }
 0x250   : > { %v1125_v11 = vsub.f32 %v2209_v24, %v1103_v10 }
 0x252   : > { %v2249_v51 = vpop.eup %1653  ;;  %v1141_v12 = vmul.f32 1.442695, %v1125_v11 }
 0x253   : > { %1165 = vadd.xlane.f32.xlu0 %v2249_v51 }
 0x254   : > { %1655 = vpow2.f32 %v1141_v12 }
 0x257   : > { %v1105_v13 = vpop.xlane.xlu2 %1104 }
 0x258   : > { %v1126_v14 = vsub.f32 %v2212_v28, %v1105_v13 }
 0x25a   : > { %v2253_v15 = vpop.eup %1655  ;;  %v1143_v16 = vmul.f32 1.442695, %v1126_v14 }
 0x25b   : > { %1167 = vadd.xlane.f32.xlu1 %v2253_v15 }
 0x25c   : > { %1657 = vpow2.f32 %v1143_v16 }
 0x25f   : > { %v1107_v17 = vpop.xlane.xlu2 %1106 }
 0x260   : > { %v1127_v18 = vsub.f32 %v2215_v32, %v1107_v17 }
 0x262   : > { %v2257_v19 = vpop.eup %1657  ;;  %v1145_v20 = vmul.f32 1.442695, %v1127_v18 }
 0x263   : > { %1169 = vadd.xlane.f32.xlu2 %v2257_v19 }
 0x264   : > { %1659 = vpow2.f32 %v1145_v20 }
 0x267   : > { %v1109_v21 = vpop.xlane.xlu0 %1108 }
 0x268   : > { %v1128_v22 = vsub.f32 %v2218_v36, %v1109_v21 }
 0x26a   : > { %v2261_v23 = vpop.eup %1659  ;;  %v1147_v24 = vmul.f32 1.442695, %v1128_v22 }
 0x26b   : > { %1171 = vadd.xlane.f32.xlu0 %v2261_v23 }
 0x26c   : > { %1661 = vpow2.f32 %v1147_v24 }
 0x26f   : > { %v1111_v25 = vpop.xlane.xlu1 %1110 }
 0x270   : > { %v1129_v26 = vsub.f32 %v2221_v40, %v1111_v25 }
 0x272   : > { %v2265_v27 = vpop.eup %1661  ;;  %v1149_v28 = vmul.f32 1.442695, %v1129_v26 }
 0x273   : > { %1173 = vadd.xlane.f32.xlu1 %v2265_v27 }
 0x274   : > { %1663 = vpow2.f32 %v1149_v28 }
 0x277   : > { %v1113_v29 = vpop.xlane.xlu2 %1112 }
 0x278   : > { %v1130_v30 = vsub.f32 %v2224_v44, %v1113_v29 }
 0x27a   : > { %v2269_v31 = vpop.eup %1663  ;;  %v1151_v32 = vmul.f32 1.442695, %v1130_v30 }
 0x27b   : > { %1175 = vadd.xlane.f32.xlu2 %v2269_v31 }
 0x27c   : > { %1665 = vpow2.f32 %v1151_v32 }
 0x27f   : > { %v1115_v33 = vpop.xlane.xlu0 %1114 }
 0x280   : > { %v1131_v34 = vsub.f32 %v2227_v46, %v1115_v33 }
 0x282   : > { %v2273_v35 = vpop.eup %1665  ;;  %v1153_v36 = vmul.f32 1.442695, %v1131_v34 }
 0x283   : > { %1177 = vadd.xlane.f32.xlu0 %v2273_v35 }
 0x284   : > { %1667 = vpow2.f32 %v1153_v36 }
 0x287   : > { %v1117_v37 = vpop.xlane.xlu1 %1116 }
 0x288   : > { %v1132_v38 = vsub.f32 %v2230_v52, %v1117_v37 }
 0x28a   : > { %v2277_v39 = vpop.eup %1667  ;;  %v1155_v40 = vmul.f32 1.442695, %v1132_v38 }
 0x28b   : > { %1179 = vadd.xlane.f32.xlu1 %v2277_v39 }
 0x28c   : > { %1669 = vpow2.f32 %v1155_v40 }
 0x28f   : > { %v1119_v41 = vpop.xlane.xlu2 %1118 }
 0x290   : > { %v1133_v42 = vsub.f32 %v2233_v56, %v1119_v41 }
 0x292   : > { %v2281_v43 = vpop.eup %1669  ;;  %v1157_v44 = vmul.f32 1.442695, %v1133_v42 }
 0x293   : > { %1181 = vadd.xlane.f32.xlu2 %v2281_v43 }
 0x294   : > { %1671 = vpow2.f32 %v1157_v44 }
 0x297   : > { %v1121_v62 = vpop.xlane.xlu0 %1120 }
 0x298   : > { %v1134_v63 = vsub.f32 %v2236_v60, %v1121_v62 }
 0x29a   : > { %v2285_v45 = vpop.eup %1671  ;;  %v1159_v46 = vmul.f32 1.442695, %v1134_v63 }
 0x29b   : > { %1183 = vadd.xlane.f32.xlu0 %v2285_v45 }
 0x29c   : > { %1673 = vpow2.f32 %v1159_v46 }
 0x2a2   : > { %v2288_v48 = vpop.eup %1673 }
 0x2a3   : > { %1185 = vadd.xlane.f32.xlu1 %v2288_v48 }
 0x2b6   : > { %v1162_v49 = vpop.xlane.xlu1 %1161 }
 0x2b7   : > { %1675 = vrcp.f32 %v1162_v49 }
 0x2bd   : > { %v1676_v50 = vpop.eup %1675 }
 0x2be   : > { %v1200_v52 = vmul.f32 %v1676_v50, %v1162_v49  ;;  %v1164_v53 = vpop.xlane.xlu2 %1163 }
 0x2bf   : > { %1677 = vrcp.f32 %v1164_v53 }
 0x2c0   : > { %v1213_v54 = vsub.f32 2.0, %v1200_v52 }
 0x2c2   : > { %v1226_v55 = vmul.f32 %v1676_v50, %v1213_v54 }
 0x2c4   : > { %v1239_v56 = vmul.f32 %v2241_v5, %v1226_v55 }
 0x2c5   : > { %v1678_v57 = vpop.eup %1677 }
 0x2c6   : > { %1252 = vst [vmem:[%s2295_s9] sm:$0xff] %v1239_v56  ;;  %v1201_v58 = vmul.f32 %v1678_v57, %v1164_v53  ;;  %v1166_v59 = vpop.xlane.xlu0 %1165 }
 0x2c7   : > { %1679 = vrcp.f32 %v1166_v59 }
 0x2c8   : > { %v1214_v60 = vsub.f32 2.0, %v1201_v58 }
 0x2ca   : > { %v1227_v61 = vmul.f32 %v1678_v57, %v1214_v60 }
 0x2cc   : > { %v1240_v0 = vmul.f32 %v2245_v8, %v1227_v61 }
 0x2cd   : > { %v1680_v1 = vpop.eup %1679 }
 0x2ce   : > { %1253 = vst [vmem:[%s2295_s9 + $0x8] sm:$0xff] %v1240_v0  ;;  %v1202_v2 = vmul.f32 %v1680_v1, %v1166_v59  ;;  %v1168_v3 = vpop.xlane.xlu1 %1167 }
 0x2cf   : > { %1681 = vrcp.f32 %v1168_v3 }
 0x2d0   : > { %v1215_v4 = vsub.f32 2.0, %v1202_v2 }
 0x2d2   : > { %v1228_v5 = vmul.f32 %v1680_v1, %v1215_v4 }
 0x2d4   : > { %v1241_v6 = vmul.f32 %v2249_v51, %v1228_v5 }
 0x2d5   : > { %v1682_v7 = vpop.eup %1681 }
 0x2d6   : > { %1254 = vst [vmem:[%s2295_s9 + $0x10] sm:$0xff] %v1241_v6  ;;  %v1203_v47 = vmul.f32 %v1682_v7, %v1168_v3  ;;  %v1170_v9 = vpop.xlane.xlu2 %1169 }
 0x2d7   : > { %1683 = vrcp.f32 %v1170_v9 }
 0x2d8   : > { %v1216_v10 = vsub.f32 2.0, %v1203_v47 }
 0x2da   : > { %v1229_v11 = vmul.f32 %v1682_v7, %v1216_v10 }
 0x2dc   : > { %v1242_v8 = vmul.f32 %v2253_v15, %v1229_v11 }
 0x2dd   : > { %v1684_v12 = vpop.eup %1683 }
 0x2de   : > { %1255 = vst [vmem:[%s2295_s9 + $0x18] sm:$0xff] %v1242_v8  ;;  %v1204_v13 = vmul.f32 %v1684_v12, %v1170_v9  ;;  %v1172_v14 = vpop.xlane.xlu0 %1171 }
 0x2df   : > { %1685 = vrcp.f32 %v1172_v14 }
 0x2e0   : > { %v1217_v16 = vsub.f32 2.0, %v1204_v13 }
 0x2e2   : > { %v1230_v17 = vmul.f32 %v1684_v12, %v1217_v16 }
 0x2e4   : > { %v1243_v51 = vmul.f32 %v2257_v19, %v1230_v17 }
 0x2e5   : > { %v1686_v18 = vpop.eup %1685 }
 0x2e6   : > { %1256 = vst [vmem:[%s2295_s9 + $0x20] sm:$0xff] %v1243_v51  ;;  %v1205_v20 = vmul.f32 %v1686_v18, %v1172_v14  ;;  %v1174_v21 = vpop.xlane.xlu1 %1173 }
 0x2e7   : > { %1687 = vrcp.f32 %v1174_v21 }
 0x2e8   : > { %v1218_v22 = vsub.f32 2.0, %v1205_v20 }
 0x2ea   : > { %v1231_v24 = vmul.f32 %v1686_v18, %v1218_v22 }
 0x2ec   : > { %v1244_v15 = vmul.f32 %v2261_v23, %v1231_v24 }
 0x2ed   : > { %v1688_v25 = vpop.eup %1687 }
 0x2ee   : > { %1257 = vst [vmem:[%s2295_s9 + $0x28] sm:$0xff] %v1244_v15  ;;  %v1206_v26 = vmul.f32 %v1688_v25, %v1174_v21  ;;  %v1176_v28 = vpop.xlane.xlu2 %1175 }
 0x2ef   : > { %1689 = vrcp.f32 %v1176_v28 }
 0x2f0   : > { %v1219_v29 = vsub.f32 2.0, %v1206_v26 }
 0x2f2   : > { %v1232_v30 = vmul.f32 %v1688_v25, %v1219_v29 }
 0x2f4   : > { %v1245_v19 = vmul.f32 %v2265_v27, %v1232_v30 }
 0x2f5   : > { %v1690_v32 = vpop.eup %1689 }
 0x2f6   : > { %1258 = vst [vmem:[%s2295_s9 + $0x30] sm:$0xff] %v1245_v19  ;;  %v1207_v33 = vmul.f32 %v1690_v32, %v1176_v28  ;;  %v1178_v34 = vpop.xlane.xlu0 %1177 }
 0x2f7   : > { %1691 = vrcp.f32 %v1178_v34 }
 0x2f8   : > { %v1220_v36 = vsub.f32 2.0, %v1207_v33 }
 0x2fa   : > { %v1233_v37 = vmul.f32 %v1690_v32, %v1220_v36 }
 0x2fc   : > { %v1246_v23 = vmul.f32 %v2269_v31, %v1233_v37 }
 0x2fd   : > { %v1692_v38 = vpop.eup %1691 }
 0x2fe   : > { %1259 = vst [vmem:[%s2295_s9 + $0x38] sm:$0xff] %v1246_v23  ;;  %v1208_v40 = vmul.f32 %v1692_v38, %v1178_v34  ;;  %v1180_v41 = vpop.xlane.xlu1 %1179 }
 0x2ff   : > { %1693 = vrcp.f32 %v1180_v41 }
 0x300   : > { %v1221_v42 = vsub.f32 2.0, %v1208_v40 }
 0x302   : > { %v1234_v44 = vmul.f32 %v1692_v38, %v1221_v42 }
 0x304   : > { %v1247_v27 = vmul.f32 %v2273_v35, %v1234_v44 }
 0x305   : > { %v1694_v62 = vpop.eup %1693 }
 0x306   : > { %1260 = vst [vmem:[%s2295_s9 + $0x40] sm:$0xff] %v1247_v27  ;;  %v1209_v63 = vmul.f32 %v1694_v62, %v1180_v41  ;;  %v1182_v46 = vpop.xlane.xlu2 %1181 }
 0x307   : > { %1695 = vrcp.f32 %v1182_v46 }
 0x308   : > { %v1222_v49 = vsub.f32 2.0, %v1209_v63 }
 0x30a   : > { %v1235_v50 = vmul.f32 %v1694_v62, %v1222_v49 }
 0x30c   : > { %v1248_v31 = vmul.f32 %v2277_v39, %v1235_v50 }
 0x30d   : > { %v1696_v52 = vpop.eup %1695 }
 0x30e   : > { %1261 = vst [vmem:[%s2295_s9 + $0x48] sm:$0xff] %v1248_v31  ;;  %v1210_v53 = vmul.f32 %v1696_v52, %v1182_v46  ;;  %v1184_v54 = vpop.xlane.xlu0 %1183 }
 0x30f   : > { %1697 = vrcp.f32 %v1184_v54 }
 0x310   : > { %v1223_v55 = vsub.f32 2.0, %v1210_v53 }
 0x312   : > { %v1236_v56 = vmul.f32 %v1696_v52, %v1223_v55 }
 0x314   : > { %v1249_v35 = vmul.f32 %v2281_v43, %v1236_v56 }
 0x315   : > { %v1698_v57 = vpop.eup %1697 }
 0x316   : > { %1262 = vst [vmem:[%s2295_s9 + $0x50] sm:$0xff] %v1249_v35  ;;  %v1211_v58 = vmul.f32 %v1698_v57, %v1184_v54  ;;  %v1186_v59 = vpop.xlane.xlu1 %1185 }
 0x317   : > { %1699 = vrcp.f32 %v1186_v59 }
 0x318   : > { %v1224_v60 = vsub.f32 2.0, %v1211_v58 }
 0x31a   : > { %v1237_v39 = vmul.f32 %v1698_v57, %v1224_v60 }
 0x31c   : > { %v1250_v61 = vmul.f32 %v2285_v45, %v1237_v39 }
 0x31d   : > { %v1700_v0 = vpop.eup %1699 }
 0x31e   : > { %1263 = vst [vmem:[%s2295_s9 + $0x58] sm:$0xff] %v1250_v61  ;;  %v1212_v43 = vmul.f32 %v1700_v0, %v1186_v59 }
 0x320   : > { %v1225_v1 = vsub.f32 2.0, %v1212_v43 }
 0x322   : > { %v1238_v2 = vmul.f32 %v1700_v0, %v1225_v1 }
 0x324   : > { %v1251_v3 = vmul.f32 %v2288_v48, %v1238_v2 }
 0x326   : > { %1264 = vst [vmem:[%s2295_s9 + $0x60] sm:$0xff] %v1251_v3 }
 0x327   : > { %1728 = shalt.err (!%p1725_p3)
}
 0x328   : > { %s1765_s19 = smov 128   ;;  %s1766_s9 = smov 8  }
 0x329   : > { %1607 = dma.vmem_to_hbm [thread:$0]  (%p1845_p5), %s1279_s17, 1664, %s1281_s18, %s1266_s28, %s1765_s19, %s1765_s19, %s1766_s9  }
 0x32a PF: > { %p1613_p4 = scmp.ge.s32.totalorder %s1763_s27, 2  ;;  %s1295_s14 = sand.u32 1, %s1751_s24  }
 0x32b   : > { %s1296_s15 = scalar_lea.sflag [#allocation3], %s1295_s14 }
 0x32c   : > { %p1610_p7 = pnand %p1613_p4, %p1849_p6 }
 0x32e   : > { %p1611_p8 = pneg %p1610_p7 }
 0x330   : > { %1746 = dma.done.wait (%p1611_p8), %s1296_s15, 1664  }
 0x331   : > { %1748 = vsyncadd (%p1611_p8), %s1296_s15, 4294965632  ;;  %p17_p9 = scmp.ge.s32.totalorder %s1832_s30, 4   ;;  %s2366_s24 = smov %s1755_s25 }
 0x332   : > { %s2367_s25 = smov %s1759_s26  ;;  %s2368_s26 = smov %s1843_s10 }
 0x333   : > { %s2369_s27 = smov %s1832_s30  ;;  %19 = sbr.rel (!%p17_p9) target bundleno = 3 (0x3), region = 83 }
 0x338   :  { %1302 = vsyncpa [#allocation3], 1 }
 0x339   :  { %1304 = vsyncpa [#allocation3 + $0x1], 1 }

</bundles_post_ra>
